<compile_context>
chip_gen: v5e
topology: v5e:2x2
jax: 0.10.0
libtpu: 0.0.40
codegen_flags: <defaults>
</compile_context>

<pallas_src>
import functools
import math

import jax
import jax.numpy as jnp
from jax.experimental import pallas as pl
from jax.experimental.pallas import tpu as pltpu


_LANES = 128            # vreg lane width: lane-dense output tiles
_ROW_ALIGN = 32         # covers the (8,128)/(16,128)/(32,128) min tiles of f32/bf16/i8 inputs
_MAX_BLOCK_ROWS = 2048  # (2048, 128) f32 block = 1 MiB; double-buffered in+out stays well under VMEM


def _path_sigmoid_kernel(x_ref, o_ref, *, max_pos: float):
    # x_ref / o_ref block: (block_rows, 128)
    x = x_ref[...].astype(jnp.float32)            # torch: x.float()
    # sigmoid(x) * 2 - 1 == tanh(x / 2)  (exact identity; tanh runs on the EUP slot)
    o_ref[...] = jnp.tanh(x * 0.5) * max_pos


def path_sigmoid_meters_forward(x: jax.Array, max_pos: float = 100.0) -> jax.Array:
    """Pallas equivalent of PathSigmoidMeters.forward.

    Works for any input shape/dtype; returns float32 of the same shape,
    computed as (sigmoid(x.float()) * 2 - 1) * max_pos.
    """
    orig_shape = x.shape
    n = math.prod(orig_shape) if orig_shape else 1
    if n == 0:
        return jnp.zeros(orig_shape, jnp.float32)

    rows = pl.cdiv(n, _LANES)
    rows_aligned = pl.cdiv(rows, _ROW_ALIGN) * _ROW_ALIGN   # tiny sublane-alignment pad only
    block_rows = min(_MAX_BLOCK_ROWS, rows_aligned)
    padded_n = rows_aligned * _LANES

    x_flat = jnp.ravel(x)
    if padded_n != n:
        x_flat = jnp.pad(x_flat, (0, padded_n - n))
    x2d = x_flat.reshape(rows_aligned, _LANES)

    kernel = functools.partial(_path_sigmoid_kernel, max_pos=float(max_pos))
    out2d = pl.pallas_call(
        kernel,
        out_shape=jax.ShapeDtypeStruct((rows_aligned, _LANES), jnp.float32),
        # cdiv grid: only the last block may overhang the array edge (masked edge stores
        # for that one block) instead of padding the whole input up to a block multiple.
        grid=(pl.cdiv(rows_aligned, block_rows),),
        in_specs=[pl.BlockSpec((block_rows, _LANES), lambda i: (i, 0))],
        out_specs=pl.BlockSpec((block_rows, _LANES), lambda i: (i, 0)),
        compiler_params=pltpu.CompilerParams(
            dimension_semantics=("parallel",),  # v7x: split blocks across both TCs
        ),
    )(x2d)

    out = out2d.reshape(-1)
    if padded_n != n:
        out = out[:n]
    return out.reshape(orig_shape)


def _reference_forward(x: jax.Array, max_pos: float) -> jax.Array:
    # Pure-JAX reference of the PyTorch module for correctness checking.
    return (jax.nn.sigmoid(x.astype(jnp.float32)) * 2.0 - 1.0) * max_pos


if __name__ == "__main__":
    max_pos = 100.0
    bs, ch, seq = 2, 3, 8   # path tensor: [bs, 3 (x, y, z), seq_len]

    key = jax.random.PRNGKey(0)
    x = jax.random.normal(key, (bs, ch, seq), jnp.float32) * 3.0

    out = path_sigmoid_meters_forward(x, max_pos)
    out = jax.block_until_ready(out)

    ref = _reference_forward(x, max_pos)
    assert out.shape == x.shape, out.shape
    assert out.dtype == jnp.float32
    assert jnp.allclose(out, ref, atol=1e-3, rtol=1e-5), "mismatch vs reference"

    # Also exercise a larger, non-aligned shape (multi-block grid + partial edge block).
    x2 = jax.random.normal(jax.random.PRNGKey(0), (5, 3, 333), jnp.bfloat16)
    out2 = jax.block_until_ready(path_sigmoid_meters_forward(x2, max_pos))
    ref2 = _reference_forward(x2, max_pos)
    assert out2.shape == x2.shape and out2.dtype == jnp.float32
    assert jnp.allclose(out2, ref2, atol=1e-2, rtol=1e-3), "mismatch vs reference (bf16)"

    print("KERNEL_OK")
</pallas_src>

<mosaic_0001>
module attributes {stable_mosaic.version = 11 : i64} {
  func.func @_path_sigmoid_kernel(%arg0: i32, %arg1: memref<32x128xf32, #tpu.memory_space<vmem>>, %arg2: memref<32x128xf32, #tpu.memory_space<vmem>>) attributes {dimension_semantics = [#tpu.dimension_semantics<parallel>], iteration_bounds = array<i64: 1>, scalar_prefetch = 0 : i64, scratch_operands = 0 : i64, tpu.core_type = #tpu.core_type<tc>, window_params = [{transform_indices = @transform_0, window_bounds = array<i64: 32, 128>}, {transform_indices = @transform_1, window_bounds = array<i64: 32, 128>}]} {
    %c0 = arith.constant 0 : index
    %c0_0 = arith.constant 0 : index
    %0 = vector.load %arg1[%c0, %c0_0] : memref<32x128xf32, #tpu.memory_space<vmem>>, vector<32x128xf32>
    %cst = arith.constant 5.000000e-01 : f32
    %1 = vector.broadcast %cst : f32 to vector<32x128xf32>
    %2 = arith.mulf %0, %1 : vector<32x128xf32>
    %3 = math.tanh %2 : vector<32x128xf32>
    %cst_1 = arith.constant 1.000000e+02 : f32
    %4 = vector.broadcast %cst_1 : f32 to vector<32x128xf32>
    %5 = arith.mulf %3, %4 : vector<32x128xf32>
    %c0_2 = arith.constant 0 : index
    %c0_3 = arith.constant 0 : index
    %6 = vector.load %arg2[%c0_2, %c0_3] : memref<32x128xf32, #tpu.memory_space<vmem>>, vector<32x128xf32>
    tpu.vector_store %arg2[%c0_2, %c0_3], %5 {strides = array<i32>} : memref<32x128xf32, #tpu.memory_space<vmem>>, vector<32x128xf32>,
    return
  }
  func.func @transform_0(%arg0: i32) -> (i32, i32) {
    %c0_i32 = arith.constant 0 : i32
    %c0_i32_0 = arith.constant 0 : i32
    return %arg0, %c0_i32 : i32, i32
  }
  func.func @transform_1(%arg0: i32) -> (i32, i32) {
    %c0_i32 = arith.constant 0 : i32
    %c0_i32_0 = arith.constant 0 : i32
    return %arg0, %c0_i32 : i32, i32
  }
}

</mosaic_0001>

<bundles_post_ra>
// kernel: tpu_custom_call.1
= control target key start
LH: loop header
LB: loop body
LE: loop exit
PB: predicated region body
PF: predicated region fallthrough
CT: control target
= control target key end

     0   :  { %6 = vsyncpa [#allocation3], 0  ;;  %s154_s0 = inlined_call_operand.hbm [shape: f32[32,128], index: 0, kind: input, shape index: {}]   ;;  %s155_s1 = inlined_call_operand.hbm [shape: f32[32,128], index: 1, kind: output, shape index: {}]  }
   0x1   :  { %7 = vsyncpa [#allocation4], 0  ;;  %s12_s8 = sshll.u32 %s154_s0, 4  ;;  %s128_s9 = smov [#allocation2]   ;;  %s13_s8 = int_to_ptr.hbm [resolvable:$true] %s12_s8 }
   0x2   :  { %s14_s10 = sshll.u32 %s128_s9, 4  ;;  %s129_s11 = smov 128   ;;  %s15_s10 = int_to_ptr.vmem [resolvable:$true] %s14_s10 }
   0x3   :  { %s130_s12 = smov 8  }
   0x4   :  { %20 = dma.hbm_to_vmem [thread:$0]  %s13_s8, 512, %s15_s10, [#allocation3], %s129_s11, %s129_s11, %s130_s12  }
   0x5   :  { %124 = dma.done.wait [#allocation3], 512  }
   0x6   :  { %125 = vsyncadd [#allocation3], 4294966784  ;;  %v25_v0 = vld [vmem:[#allocation2] sm:$0xff]  ;;  %v26_v1 = vld [vmem:[#allocation2 + $0x8] sm:$0xff]  ;;  %s131_s0 = smov [#allocation5]   ;;  %s51_s16 = sshll.u32 %s155_s1, 4  ;;  %s52_s16 = int_to_ptr.hbm [resolvable:$true] %s51_s16 }
   0x7   :  { %v27_v2 = vld [vmem:[#allocation2 + $0x10] sm:$0xff]  ;;  %v29_v3 = vmul.f32 0.5, %v25_v0  ;;  %v30_v4 = vmul.f32 0.5, %v26_v1  ;;  %v28_v6 = vld [vmem:[#allocation2 + $0x18] sm:$0xff]  ;;  %s49_s13 = sshll.u32 %s131_s0, 4  ;;  %s50_s13 = int_to_ptr.vmem [resolvable:$true] %s49_s13 }
   0x8   :  { %v31_v5 = vmul.f32 0.5, %v27_v2  ;;  %v32_v7 = vmul.f32 0.5, %v28_v6 }
   0x9   :  { %68 = vtanh.f32 %v29_v3 }
   0xa   :  { %70 = vtanh.f32 %v30_v4 }
   0xb   :  { %72 = vtanh.f32 %v31_v5 }
   0xc   :  { %74 = vtanh.f32 %v32_v7 }
   0xf   :  { %v69_v8 = vpop.eup %68 }
  0x10   :  { %v71_v9 = vpop.eup %70  ;;  %v37_v10 = vmul.f32 100.0, %v69_v8 }
  0x11   :  { %v73_v11 = vpop.eup %72  ;;  %v38_v12 = vmul.f32 100.0, %v71_v9 }
  0x12   :  { %v75_v13 = vpop.eup %74  ;;  %41 = vst [vmem:[#allocation5] sm:$0xff] %v37_v10  ;;  %v39_v14 = vmul.f32 100.0, %v73_v11 }
  0x13   :  { %42 = vst [vmem:[#allocation5 + $0x8] sm:$0xff] %v38_v12  ;;  %v40_v15 = vmul.f32 100.0, %v75_v13 }
  0x14   :  { %43 = vst [vmem:[#allocation5 + $0x10] sm:$0xff] %v39_v14 }
  0x15   :  { %44 = vst [vmem:[#allocation5 + $0x18] sm:$0xff] %v40_v15 }
  0x16   :  { %57 = dma.vmem_to_hbm [thread:$0]  %s50_s13, 512, %s52_s16, [#allocation4], %s129_s11, %s129_s11, %s130_s12  }
  0x17   :  { %126 = dma.done.wait [#allocation4], 512  }
  0x18   :  { %127 = vsyncadd [#allocation4], 4294966784 }
  0x19   :  { %62 = vsyncpa [#allocation3], 1 }
  0x1a   :  { %63 = vsyncpa [#allocation4], 1 }

</bundles_post_ra>
